<compile_context>
chip_gen: v5e
topology: v5e:2x2
jax: 0.10.0
libtpu: 0.0.40
codegen_flags: <defaults>
</compile_context>

<pallas_src>
import math
import functools

import jax
import jax.numpy as jnp
from jax.experimental import pallas as pl
from jax.experimental.pallas import tpu as pltpu

CUTOFF_LOWER = 1e-12
CUTOFF_UPPER = 5.0

# ~2 MiB per f32 tile. With input+output each double-buffered this is <= 8 MiB
# of VMEM — safe on every generation without raising vmem_limit_bytes.
_TARGET_BLOCK_ELEMS = 512 * 1024
_LANE_WIDTHS = (2048, 1024, 512, 256, 128)


def _cosine_cutoff_kernel(d_ref, o_ref, *, scale, offset, cutoff_lower,
                          cutoff_upper, lower_positive):
    # Compute in f32 regardless of input dtype (consistent accuracy across
    # v5e/v6e/v7x); cast once at the store.
    d = d_ref[...].astype(jnp.float32)
    if lower_positive:
        c = 0.5 * (jnp.cos(d * scale + offset) + 1.0)
        mask = (d > cutoff_lower) & (d < cutoff_upper)
    else:
        c = 0.5 * (jnp.cos(d * scale) + 1.0)
        mask = d < cutoff_upper
    o_ref[...] = jnp.where(mask, c, 0.0).astype(o_ref.dtype)


def _pick_cols(n):
    """Largest lane width (multiple of 128) that exactly divides n, else None."""
    for cols in _LANE_WIDTHS:
        if n % cols == 0:
            return cols
    return None


def _pick_block_rows(rows, cols):
    """Rows per tile: full extent if small, else a multiple of 8 sized to ~2 MiB."""
    if rows * cols <= _TARGET_BLOCK_ELEMS:
        return rows                       # single full-extent block (always legal)
    br = max(8, (_TARGET_BLOCK_ELEMS // cols) // 8 * 8)
    return min(rows, br)


def _run_slab(slab, kernel):
    rows, cols = slab.shape
    block_rows = _pick_block_rows(rows, cols)
    grid = (pl.cdiv(rows, block_rows),)
    n = rows * cols
    itemsize = jnp.dtype(slab.dtype).itemsize
    cost = pl.CostEstimate(
        flops=8 * n,
        transcendentals=n,
        bytes_accessed=2 * n * itemsize,
    )
    return pl.pallas_call(
        kernel,
        out_shape=jax.ShapeDtypeStruct((rows, cols), slab.dtype),
        grid=grid,
        in_specs=[pl.BlockSpec((block_rows, cols), lambda i: (i, 0))],
        out_specs=pl.BlockSpec((block_rows, cols), lambda i: (i, 0)),
        compiler_params=pltpu.CompilerParams(
            dimension_semantics=("parallel",),
        ),
        cost_estimate=cost,
    )(slab)


def cosine_cutoff(distances, cutoff_lower=CUTOFF_LOWER, cutoff_upper=CUTOFF_UPPER):
    """Elementwise cosine cutoff matching the PyTorch CosineCutoff.forward."""
    orig_shape = distances.shape
    n = distances.size
    if n == 0:
        return distances

    lower_positive = cutoff_lower > 0
    if lower_positive:
        # pi * (2*(d - l)/(u - l) + 1) == d*scale + offset
        scale = 2.0 * math.pi / (cutoff_upper - cutoff_lower)
        offset = math.pi * (1.0 - 2.0 * cutoff_lower / (cutoff_upper - cutoff_lower))
    else:
        scale = math.pi / cutoff_upper
        offset = 0.0

    kernel = functools.partial(
        _cosine_cutoff_kernel,
        scale=float(scale),
        offset=float(offset),
        cutoff_lower=float(cutoff_lower),
        cutoff_upper=float(cutoff_upper),
        lower_positive=lower_positive,
    )

    flat = distances.reshape(-1)
    cols = _pick_cols(n)
    if cols is not None:
        # Fast path: no pad, no slice — reshape is metadata-only.
        out = _run_slab(flat.reshape(n // cols, cols), kernel)
        return out.reshape(orig_shape)

    # Slow path: misaligned tail — pad flat array up to the next lane multiple,
    # run, then slice the valid prefix back out. (Padded elements are discarded.)
    cols = 512 if n >= 512 else 128
    n_pad = pl.cdiv(n, cols) * cols
    padded = jnp.pad(flat, (0, n_pad - n))
    out = _run_slab(padded.reshape(n_pad // cols, cols), kernel)
    return out.reshape(-1)[:n].reshape(orig_shape)


def _reference(distances, cutoff_lower=CUTOFF_LOWER, cutoff_upper=CUTOFF_UPPER):
    d = distances
    if cutoff_lower > 0:
        c = 0.5 * (jnp.cos(math.pi * (2.0 * (d - cutoff_lower)
                                      / (cutoff_upper - cutoff_lower) + 1.0)) + 1.0)
        c = c * (d < cutoff_upper).astype(d.dtype)
        c = c * (d > cutoff_lower).astype(d.dtype)
        return c
    c = 0.5 * (jnp.cos(d * math.pi / cutoff_upper) + 1.0)
    return c * (d < cutoff_upper).astype(d.dtype)


def _check(distances, atol=1e-5, rtol=1e-5):
    out = jax.block_until_ready(cosine_cutoff(distances))
    ref = _reference(distances)
    assert out.shape == distances.shape
    assert out.dtype == distances.dtype
    assert jnp.allclose(out, ref, atol=atol, rtol=rtol), "mismatch vs reference"
    return out


if __name__ == "__main__":
    key = jax.random.PRNGKey(0)
    k0, k1, k2 = jax.random.split(key, 3)

    # Primary small example: pairwise-distance-like tensor (batch=2, n_edges=8, 16)
    # with distances in [0, 7] so both inside/outside-cutoff branches are hit.
    d_small = jax.random.uniform(k0, (2, 8, 16), dtype=jnp.float32,
                                 minval=0.0, maxval=7.0)
    _check(d_small)                         # fast path, single full-extent block

    # Misaligned size -> tail-pad fallback path.
    d_odd = jax.random.uniform(k1, (3, 7, 11), dtype=jnp.float32,
                               minval=0.0, maxval=7.0)
    _check(d_odd)

    # Medium aligned case to exercise the multi-step pipelined grid
    # (including a ragged last block).
    d_med = jax.random.uniform(k2, (1280, 1024), dtype=jnp.float32,
                               minval=0.0, maxval=7.0)
    _check(d_med)

    print("KERNEL_OK")
</pallas_src>

<mosaic_0001>
module attributes {stable_mosaic.version = 11 : i64} {
  func.func @_cosine_cutoff_kernel(%arg0: i32, %arg1: memref<1x256xf32, #tpu.memory_space<vmem>>, %arg2: memref<1x256xf32, #tpu.memory_space<vmem>>) attributes {dimension_semantics = [#tpu.dimension_semantics<parallel>], iteration_bounds = array<i64: 1>, scalar_prefetch = 0 : i64, scratch_operands = 0 : i64, tpu.core_type = #tpu.core_type<tc>, window_params = [{transform_indices = @transform_0, window_bounds = array<i64: 1, 256>}, {transform_indices = @transform_1, window_bounds = array<i64: 1, 256>}]} {
    %c0 = arith.constant 0 : index
    %c0_0 = arith.constant 0 : index
    %0 = vector.load %arg1[%c0, %c0_0] : memref<1x256xf32, #tpu.memory_space<vmem>>, vector<1x256xf32>
    %cst = arith.constant 1.2566371 : f32
    %1 = vector.broadcast %cst : f32 to vector<1x256xf32>
    %2 = arith.mulf %0, %1 : vector<1x256xf32>
    %cst_1 = arith.constant 3.14159274 : f32
    %3 = vector.broadcast %cst_1 : f32 to vector<1x256xf32>
    %4 = arith.addf %2, %3 : vector<1x256xf32>
    %5 = math.cos %4 : vector<1x256xf32>
    %cst_2 = arith.constant 1.000000e+00 : f32
    %6 = vector.broadcast %cst_2 : f32 to vector<1x256xf32>
    %7 = arith.addf %5, %6 : vector<1x256xf32>
    %cst_3 = arith.constant 5.000000e-01 : f32
    %8 = vector.broadcast %cst_3 : f32 to vector<1x256xf32>
    %9 = arith.mulf %8, %7 : vector<1x256xf32>
    %cst_4 = arith.constant 9.99999996E-13 : f32
    %10 = vector.broadcast %cst_4 : f32 to vector<1x256xf32>
    %11 = arith.cmpf ogt, %0, %10 : vector<1x256xf32>
    %cst_5 = arith.constant 5.000000e+00 : f32
    %12 = vector.broadcast %cst_5 : f32 to vector<1x256xf32>
    %13 = arith.cmpf olt, %0, %12 : vector<1x256xf32>
    %14 = arith.andi %11, %13 : vector<1x256xi1>
    %cst_6 = arith.constant 0.000000e+00 : f32
    %15 = vector.broadcast %cst_6 : f32 to vector<1x256xf32>
    %16 = arith.select %14, %9, %15 : vector<1x256xi1>, vector<1x256xf32>
    %c0_7 = arith.constant 0 : index
    %c0_8 = arith.constant 0 : index
    %17 = vector.load %arg2[%c0_7, %c0_8] : memref<1x256xf32, #tpu.memory_space<vmem>>, vector<1x256xf32>
    tpu.vector_store %arg2[%c0_7, %c0_8], %16 {strides = array<i32>} : memref<1x256xf32, #tpu.memory_space<vmem>>, vector<1x256xf32>,
    return
  }
  func.func @transform_0(%arg0: i32) -> (i32, i32) {
    %c0_i32 = arith.constant 0 : i32
    %c0_i32_0 = arith.constant 0 : i32
    return %arg0, %c0_i32 : i32, i32
  }
  func.func @transform_1(%arg0: i32) -> (i32, i32) {
    %c0_i32 = arith.constant 0 : i32
    %c0_i32_0 = arith.constant 0 : i32
    return %arg0, %c0_i32 : i32, i32
  }
}

</mosaic_0001>

<bundles_post_ra>
// kernel: tpu_custom_call.1
= control target key start
LH: loop header
LB: loop body
LE: loop exit
PB: predicated region body
PF: predicated region fallthrough
CT: control target
= control target key end

     0   :  { %6 = vsyncpa [#allocation3], 0  ;;  %s356_s0 = inlined_call_operand.hbm [shape: f32[1,256], index: 0, kind: input, shape index: {}]   ;;  %s357_s1 = inlined_call_operand.hbm [shape: f32[1,256], index: 1, kind: output, shape index: {}]  }
   0x1   :  { %7 = vsyncpa [#allocation4], 0  ;;  %s13_s8 = sshll.u32 %s356_s0, 4  ;;  %s272_s9 = smov [#allocation2]   ;;  %s14_s8 = int_to_ptr.hbm [resolvable:$true] %s13_s8 }
   0x2   :  { %s15_s10 = sshll.u32 %s272_s9, 4  ;;  %s16_s10 = int_to_ptr.vmem [resolvable:$true] %s15_s10 }
   0x3   :  { %18 = dma.hbm_to_vmem [thread:$0]  %s14_s8, 32, %s16_s10, [#allocation3]  }
   0x4   :  { %268 = dma.done.wait [#allocation3], 32  }
   0x5   :  { %269 = vsyncadd [#allocation3], 4294967264  ;;  %v294_v0 = vld [vmem:[#allocation2] sm:$0x3]  ;;  %v273_v14 = vmov 683565275  }
   0x6   :  { %v24_v1 = vmul.f32 1.2566371, %v294_v0  ;;  %v274_v16 = vmov 2475754826   ;;  %v275_v18 = vmov 2131351028  }
   0x7   :  { %v276_v20 = vmov 2102212464   ;;  %v277_v22 = vmov 920167782   ;;  %v278_v28 = vmov 1326507024  }
   0x8   :  { %v297_v2 = vadd.f32 3.1415927, %v24_v1  ;;  %s280_s0 = smov [#allocation5]   ;;  %s198_s14 = sshll.u32 %s357_s1, 4  ;;  %s199_s14 = int_to_ptr.hbm [resolvable:$true] %s198_s14 }
   0x9   :  { %s196_s11 = sshll.u32 %s280_s0, 4  ;;  %s197_s11 = int_to_ptr.vmem [resolvable:$true] %s196_s11 }
   0xa   :  { %v29_v3 = vand.u32 2139095040, %v297_v2  ;;  %v26_v5 = vand.u32 2147483647, %v297_v2  ;;  %vm28_vm12 = vcmp.lt.s32.totalorder %v297_v2, 0 }
   0xc   :  { %v30_v4 = vshrl.u32 %v29_v3, 23  ;;  %v33_v8 = vand.u32 8388607, %v26_v5  ;;  %vm341_vm13 = vcmp.le.f32.partialorder %v26_v5, 0.7853982 }
   0xe   :  { %v208_v6 = vadd.s32 4294967169, %v30_v4  ;;  %v34_v11 = vor.u32 8388608, %v33_v8  ;;  %v279_v4 = vmov 0  }
  0x10   :  { %v36_v7 = vadd.s32 1, %v208_v6  ;;  %v306_v30 = vshll.u32 %v34_v11, 8 }
  0x12   :  { %vm37_vm0 = vcmp.gt.s32.totalorder %v36_v7, 0  ;;  %v75_v42 = vand.u32 65535, %v306_v30  ;;  %v76_v43 = vshrl.u32 %v306_v30, 16 }
  0x13   :  { %v38_v9 = vsel %vm37_vm0, %v36_v7, 0 }
  0x14   :  { %v40_v10 = vand.u32 31, %v38_v9  ;;  %v303_v12 = vshrl.u32 %v38_v9, 5 }
  0x16   :  { %v41_v13 = vsub.s32 32, %v40_v10  ;;  %v43_v15 = vshll.u32 %v273_v14, %v40_v10  ;;  %v46_v17 = vshll.u32 %v274_v16, %v40_v10  ;;  %v49_v19 = vshll.u32 %v275_v18, %v40_v10 }
  0x17   :  { %v52_v21 = vshll.u32 %v276_v20, %v40_v10  ;;  %v55_v23 = vshll.u32 %v277_v22, %v40_v10  ;;  %vm58_vm1 = vcmp.lt.s32.totalorder %v303_v12, 1  ;;  %vm61_vm2 = vcmp.lt.s32.totalorder %v303_v12, 4 }
  0x18   :  { %v44_v24 = vshrl.u32 %v274_v16, %v41_v13  ;;  %v47_v25 = vshrl.u32 %v275_v18, %v41_v13  ;;  %v50_v26 = vshrl.u32 %v276_v20, %v41_v13  ;;  %v53_v27 = vshrl.u32 %v277_v22, %v41_v13 }
  0x19   :  { %v56_v29 = vshrl.u32 %v278_v28, %v41_v13  ;;  %vm60_vm3 = vcmp.lt.s32.totalorder %v303_v12, 3  ;;  %vm59_vm4 = vcmp.lt.s32.totalorder %v303_v12, 2  ;;  %v42_v50 = vshrl.u32 %v273_v14, %v41_v13 }
  0x1a   :  { %v45_v31 = vor.u32 %v44_v24, %v43_v15  ;;  %v48_v32 = vor.u32 %v47_v25, %v46_v17  ;;  %v51_v33 = vor.u32 %v50_v26, %v49_v19  ;;  %v54_v34 = vor.u32 %v53_v27, %v52_v21 }
  0x1b   :  { %v57_v35 = vor.u32 %v56_v29, %v55_v23 }
  0x1c   :  { %v66_v36 = vsel %vm58_vm1, %v45_v31, %v48_v32  ;;  %v70_v37 = vsel %vm58_vm1, %v48_v32, %v51_v33  ;;  %v67_v38 = vsel %vm61_vm2, %v54_v34, 920167782  ;;  %v62_v63 = vsel %vm58_vm1, %v42_v50, %v45_v31 }
  0x1d   :  { %v71_v39 = vsel %vm61_vm2, %v57_v35, 1326507024  ;;  %v68_v40 = vsel %vm60_vm3, %v51_v33, %v67_v38  ;;  %v63_v3 = vsel %vm61_vm2, %v51_v33, 2102212464  ;;  %vm169_vm1 = vweird.f32 %v297_v2 }
  0x1e   :  { %v72_v41 = vsel %vm60_vm3, %v54_v34, %v71_v39  ;;  %v69_v44 = vsel %vm59_vm4, %v66_v36, %v68_v40  ;;  %v64_v15 = vsel %vm60_vm3, %v48_v32, %v63_v3  ;;  %vm182_vm2 = vcmp.gt.f32.partialorder %v294_v0, 1e-12 }
  0x1f   :  { %v73_v45 = vsel %vm59_vm4, %v70_v37, %v72_v41  ;;  %v99_v48 = vand.u32 65535, %v69_v44  ;;  %v100_v49 = vshrl.u32 %v69_v44, 16  ;;  %v65_v23 = vsel %vm59_vm4, %v62_v63, %v64_v15 }
  0x20   :  { %v77_v46 = vand.u32 65535, %v73_v45  ;;  %v78_v47 = vshrl.u32 %v73_v45, 16  ;;  %v119_v27 = vmul.u32 %v306_v30, %v65_v23  ;;  %vm183_vm3 = vcmp.lt.f32.partialorder %v294_v0, 5.0 }
  0x21   :  { %v101_v54 = vmul.u32 %v99_v48, %v75_v42  ;;  %v102_v55 = vmul.u32 %v100_v49, %v75_v42  ;;  %v103_v56 = vmul.u32 %v99_v48, %v76_v43  ;;  %v104_v60 = vmul.u32 %v100_v49, %v76_v43  ;;  %vm184_vm4 = vmand %vm182_vm2, %vm183_vm3 }
  0x22   :  { %v79_v51 = vmul.u32 %v77_v46, %v75_v42  ;;  %v80_v52 = vmul.u32 %v78_v47, %v75_v42  ;;  %v81_v53 = vmul.u32 %v77_v46, %v76_v43  ;;  %v82_v57 = vmul.u32 %v78_v47, %v76_v43 }
  0x23   :  { %v105_v61 = vshll.u32 %v102_v55, 16  ;;  %v107_v62 = vshll.u32 %v103_v56, 16  ;;  %v106_v13 = vshrl.u32 %v102_v55, 16  ;;  %v108_v19 = vshrl.u32 %v103_v56, 16 }
  0x24   :  { %v83_v58 = vshll.u32 %v80_v52, 16  ;;  %v85_v59 = vshll.u32 %v81_v53, 16  ;;  %v84_v8 = vshrl.u32 %v80_v52, 16  ;;  %v86_v16 = vshrl.u32 %v81_v53, 16 }
  0x25   :  { %vm109_vm6 = vc.u32 %v101_v54, %v105_v61  ;;  %v111_v7 = vadd.s32 %v105_v61, %v101_v54 }
  0x26   :  { %vm87_vm5 = vc.u32 %v79_v51, %v83_v58  ;;  %v89_v1 = vadd.s32 %v83_v58, %v79_v51  ;;  %v110_v10 = vsel %vm109_vm6, 1, %v279_v4 }
  0x27   :  { %v88_v6 = vsel %vm87_vm5, 1, %v279_v4  ;;  %v112_v14 = vadd.s32 %v110_v10, %v104_v60  ;;  %vm113_vm8 = vc.u32 %v111_v7, %v107_v62  ;;  %v115_v22 = vadd.s32 %v111_v7, %v107_v62 }
  0x28   :  { %v90_v9 = vadd.s32 %v88_v6, %v82_v57  ;;  %vm91_vm7 = vc.u32 %v89_v1, %v85_v59  ;;  %v114_v18 = vsel %vm113_vm8, 1, %v279_v4 }
  0x29   :  { %v92_v11 = vsel %vm91_vm7, 1, %v279_v4  ;;  %v116_v20 = vadd.s32 %v114_v18, %v112_v14 }
  0x2a   :  { %v94_v17 = vadd.s32 %v92_v11, %v90_v9 }
  0x2b   :  { %v117_v24 = vadd.s32 %v116_v20, %v106_v13 }
  0x2c   :  { %v95_v21 = vadd.s32 %v94_v17, %v84_v8  ;;  %v186_v17 = vlaneseq }
  0x2d   :  { %v118_v26 = vadd.s32 %v117_v24, %v108_v19 }
  0x2e   :  { %v96_v25 = vadd.s32 %v95_v21, %v86_v16  ;;  %vm188_vm5 = vcmp.lt.s32.totalorder %v186_v17, 256 }
  0x2f   :  { %v122_v28 = vadd.s32 1, %v118_v26 }
  0x30   :  { %vm121_vm9 = vc.u32 %v96_v25, %v115_v22  ;;  %v120_v12 = vadd.s32 %v115_v22, %v96_v25 }
  0x31   :  { %v123_v29 = vsel %vm121_vm9, %v122_v28, %v118_v26 }
  0x32   :  { %v124_v31 = vadd.s32 %v123_v29, %v119_v27 }
  0x34   :  { %v125_v32 = vadd.s32 536870912, %v124_v31 }
  0x36   :  { %v126_v33 = vshrl.u32 %v125_v32, 30 }
  0x38   :  { %v127_v34 = vshll.u32 %v126_v33, 30  ;;  %v150_v54 = vsub.s32 4, %v126_v33 }
  0x3a   :  { %v128_v35 = vsub.s32 %v124_v31, %v127_v34  ;;  %v151_v59 = vsel %vm28_vm12, %v150_v54, %v126_v33 }
  0x3b   :  { %v153_v62 = vsel %vm341_vm13, 0, %v151_v59 }
  0x3c   :  { %vm129_vm10 = vcmp.lt.s32.totalorder %v128_v35, 0  ;;  %v130_v36 = vsub.s32 0, %v128_v35  ;;  %v170_v4 = vand.u32 3, %v153_v62 }
  0x3e   :  { %v131_v37 = vsel %vm129_vm10, %v130_v36, %v128_v35  ;;  %vm175_vm14 = vcmp.eq.s32.totalorder %v170_v4, 2  ;;  %vm172_vm15 = vcmp.eq.s32.totalorder %v170_v4, 0  ;;  %vm171_vm0 = vcmp.lt.s32.totalorder %v170_v4, 2 }
  0x3f   :  { %v132_v38 = vclz %v131_v37 }
  0x41   :  { %v209_v39 = vadd.s32 4294967294, %v132_v38 }
  0x43   :  { %vm210_vm11 = vcmp.lt.s32.totalorder %v209_v39, 0 }
  0x44   :  { %v135_v40 = vsel %vm210_vm11, 0, %v209_v39 }
  0x45   :  { %v136_v41 = vsub.s32 32, %v135_v40  ;;  %v137_v42 = vshll.u32 %v128_v35, %v135_v40  ;;  %v140_v43 = vsub.s32 4294967266, %v135_v40 }
  0x47   :  { %v138_v30 = vshrl.u32 %v120_v12, %v136_v41  ;;  %v141_v44 = vadd.s32 127, %v140_v43 }
  0x49   :  { %v139_v45 = vor.u32 %v138_v30, %v137_v42  ;;  %v142_v46 = vshll.u32 %v141_v44, 23 }
  0x4b   :  { %v143_v47 = vor.u32 4788187, %v142_v46  ;;  %v146_v48 = vcvt.s32.f32 %v139_v45 }
  0x4d   :  { %v144_v49 = vand.u32 2147483647, %v143_v47 }
  0x4f   :  { %v147_v50 = vmul.f32 %v146_v48, %v144_v49 }
  0x51   :  { %v148_v52 = vxor.u32 2147483648, %v147_v50 }
  0x53   :  { %v149_v53 = vsel %vm28_vm12, %v148_v52, %v147_v50 }
  0x54   :  { %v152_v55 = vsel %vm341_vm13, %v297_v2, %v149_v53 }
  0x55   :  { %v154_v56 = vmul.f32 %v152_v55, %v152_v55 }
  0x57   :  { %v155_v57 = vmul.f32 -0.001358992, %v154_v56  ;;  %v162_v58 = vmul.f32 -0.00019511016, %v154_v56 }
  0x59   :  { %v156_v60 = vadd.f32 0.041655596, %v155_v57  ;;  %v163_v61 = vadd.f32 0.008332121, %v162_v58 }
  0x5b   :  { %v157_v5 = vmul.f32 %v156_v60, %v154_v56  ;;  %v164_v63 = vmul.f32 %v163_v61, %v154_v56 }
  0x5d   :  { %v158_v1 = vadd.f32 -0.4999988, %v157_v5  ;;  %v165_v3 = vadd.f32 -0.16666654, %v164_v63 }
  0x5f   :  { %v159_v6 = vmul.f32 %v158_v1, %v154_v56  ;;  %v166_v7 = vmul.f32 %v165_v3, %v154_v56 }
  0x61   :  { %v160_v8 = vadd.f32 1.0, %v159_v6  ;;  %v167_v9 = vadd.f32 1.0, %v166_v7 }
  0x63   :  { %v168_v10 = vmul.f32 %v167_v9, %v152_v55  ;;  %v176_v11 = vxor.u32 2147483648, %v160_v8 }
  0x65   :  { %v173_v13 = vxor.u32 2147483648, %v168_v10  ;;  %v177_v14 = vsel %vm175_vm14, %v176_v11, %v168_v10 }
  0x67   :  { %v174_v15 = vsel %vm172_vm15, %v160_v8, %v173_v13 }
  0x68   :  { %v178_v16 = vsel %vm171_vm0, %v174_v15, %v177_v14 }
  0x69   :  { %v179_v18 = vsel %vm169_vm1, nan, %v178_v16 }
  0x6a   :  { %v180_v19 = vadd.f32 1.0, %v179_v18 }
  0x6c   :  { %v181_v20 = vmul.f32 0.5, %v180_v19 }
  0x6e   :  { %v185_v2 = vsel %vm184_vm4, %v181_v20, 0.0 }
  0x6f   :  { %190 = vst.msk [vmem:[#allocation5] sm:$0x3] %vm188_vm5, %v185_v2 }
  0x70   :  { %201 = dma.vmem_to_hbm [thread:$0]  %s197_s11, 32, %s199_s14, [#allocation4]  }
  0x71   :  { %270 = dma.done.wait [#allocation4], 32  }
  0x72   :  { %271 = vsyncadd [#allocation4], 4294967264 }
  0x73   :  { %206 = vsyncpa [#allocation3], 1 }
  0x74   :  { %207 = vsyncpa [#allocation4], 1 }

</bundles_post_ra>
